<compile_context>
chip_gen: v6e
topology: v6e:2x2x1
jax: 0.10.0
libtpu: 0.0.40
codegen_flags: <defaults>
</compile_context>

<pallas_src>
import functools

import jax
import jax.numpy as jnp
from jax.experimental import pallas as pl
from jax.experimental.pallas import tpu as pltpu


def _round_up(x, m):
    return (x + m - 1) // m * m


def _round_down(x, m):
    return x // m * m


def _vmem_capacity_bytes():
    # Generation-aware VMEM capacity (v5e/v6e: 128 MiB, v7x: 64 MiB per TC).
    try:
        return int(pltpu.get_tpu_info().vmem_capacity_bytes)
    except Exception:
        return 64 * 1024 * 1024  # conservative fallback (v7x per-TC)


# --------------------------------------------------------------------------
# Kernels
# --------------------------------------------------------------------------
def _fused_kernel(x_ref, o_ref, *, inv_hw, eps):
    """Whole (blk, hw) tile per step: stats + normalize + ReLU in one pass."""
    x = x_ref[...].astype(jnp.float32)
    mean = jnp.sum(x, axis=-1, keepdims=True) * inv_hw
    xc = x - mean
    # Centered variance: tile is resident and the kernel is DMA-bound, so the
    # second reduction is hidden filler; avoids E[x^2]-mean^2 cancellation.
    var = jnp.sum(xc * xc, axis=-1, keepdims=True) * inv_hw
    y = xc * jax.lax.rsqrt(var + eps)
    o_ref[...] = jnp.maximum(y, 0.0).astype(o_ref.dtype)


def _stats_kernel(x_ref, sum_ref, sq_ref, *, hw, hw_tile, ragged):
    """Pass 1 of chunked path: accumulate per-row sum / sum-of-squares over hw chunks."""
    k = pl.program_id(1)

    @pl.when(k == 0)
    def _():
        sum_ref[...] = jnp.zeros_like(sum_ref)
        sq_ref[...] = jnp.zeros_like(sq_ref)

    x = x_ref[...].astype(jnp.float32)
    if ragged:
        # Only the final chunk extends past hw; OOB columns are undefined -> zero them.
        col = jax.lax.broadcasted_iota(jnp.int32, x.shape, 1) + k * hw_tile
        x = jnp.where(col < hw, x, 0.0)
    sum_ref[...] += jnp.sum(x, axis=-1, keepdims=True)
    sq_ref[...] += jnp.sum(x * x, axis=-1, keepdims=True)


def _apply_kernel(x_ref, sum_ref, sq_ref, o_ref, *, inv_hw, eps):
    """Pass 2 of chunked path: normalize + ReLU using precomputed row stats."""
    x = x_ref[...].astype(jnp.float32)
    mean = sum_ref[...] * inv_hw
    var = jnp.maximum(sq_ref[...] * inv_hw - mean * mean, 0.0)
    y = (x - mean) * jax.lax.rsqrt(var + eps)
    o_ref[...] = jnp.maximum(y, 0.0).astype(o_ref.dtype)


# --------------------------------------------------------------------------
# Wrapper
# --------------------------------------------------------------------------
def instance_norm_relu(x, eps=1e-5, *, force_hw_tile=None):
    """x: (N, C, H, W). Returns relu(instance_norm(x)), same shape/dtype."""
    N, C, H, W = x.shape
    rows = N * C
    hw = H * W
    dtype = x.dtype
    itemsize = jnp.dtype(dtype).itemsize

    # Sublane packing: 8 rows per vreg for 4B dtypes, 16 for 2B, 32 for 1B.
    row_align = 8 * max(1, 4 // itemsize)
    hw_lane = _round_up(hw, 128)  # VMEM lane footprint (accounting only; no data pad)

    x2 = x.reshape(rows, hw)      # free: same memory layout
    inv_hw = 1.0 / float(hw)      # statistics always use the true spatial count

    # Generation-aware scoped VMEM limit: ~48 MiB on v7x, ~96 MiB on v5e/v6e.
    vmem_cap = _vmem_capacity_bytes()
    vmem_limit = min(_round_down(vmem_cap * 3 // 4, 1 << 20), 96 * 1024 * 1024)
    # Per-element VMEM model for a fused block: in/out double-buffered + ~3 f32 temps.
    per_elem_fused = 4 * itemsize + 12
    fused_budget = int(vmem_limit * 0.8)

    min_block_bytes = row_align * hw_lane * per_elem_fused
    chunked = (force_hw_tile is not None) or (min_block_bytes > fused_budget)

    if not chunked:
        # ------------------ fused single-pass path ------------------
        # Cap each input block at ~2 MiB (streaming saturates HBM well below that)
        # and target >= 8 grid steps when rows permit (>= 2 pipelined steps per
        # TensorCore on v7x's 2-core split).
        cap_bytes = 2 * 1024 * 1024
        blk_cap = max(row_align,
                      _round_down(cap_bytes // (hw_lane * itemsize), row_align))
        blk_steps = max(row_align, _round_down(rows // 8, row_align))
        blk = max(row_align, min(blk_cap, blk_steps))
        if rows <= row_align:
            blk = rows  # full-extent row block (allowed even if not 8-aligned)

        out = pl.pallas_call(
            functools.partial(_fused_kernel, inv_hw=inv_hw, eps=float(eps)),
            out_shape=jax.ShapeDtypeStruct((rows, hw), dtype),
            grid=(pl.cdiv(rows, blk),),
            in_specs=[pl.BlockSpec((blk, hw), lambda i: (i, 0))],
            out_specs=pl.BlockSpec((blk, hw), lambda i: (i, 0)),
            compiler_params=pltpu.CompilerParams(
                dimension_semantics=("parallel",),
                vmem_limit_bytes=vmem_limit,
            ),
        )(x2)
        return out.reshape(N, C, H, W)

    # ------------------ spatial-chunked two-pass path ------------------
    blk = row_align if rows >= row_align else rows
    if force_hw_tile is not None:
        hw_tile = max(128, _round_up(int(force_hw_tile), 128))
    else:
        cap_bytes = 2 * 1024 * 1024
        hw_tile = _round_down(cap_bytes // (max(blk, 1) * itemsize), 512)
        hw_tile = max(512, hw_tile)
    hw_tile = min(hw_tile, _round_up(hw, 128))
    n_k = pl.cdiv(hw, hw_tile)
    ragged = (hw % hw_tile) != 0
    grid2 = (pl.cdiv(rows, blk), n_k)

    # Pass 1: per-row sum and sum-of-squares, accumulated across hw chunks
    # directly in the resident output blocks (init at k==0).
    sums, sqs = pl.pallas_call(
        functools.partial(_stats_kernel, hw=hw, hw_tile=hw_tile, ragged=ragged),
        out_shape=(jax.ShapeDtypeStruct((rows, 1), jnp.float32),
                   jax.ShapeDtypeStruct((rows, 1), jnp.float32)),
        grid=grid2,
        in_specs=[pl.BlockSpec((blk, hw_tile), lambda i, k: (i, k))],
        out_specs=(pl.BlockSpec((blk, 1), lambda i, k: (i, 0)),
                   pl.BlockSpec((blk, 1), lambda i, k: (i, 0))),
        compiler_params=pltpu.CompilerParams(
            dimension_semantics=("parallel", "arbitrary"),
            vmem_limit_bytes=vmem_limit,
        ),
    )(x2)

    # Pass 2: normalize + ReLU, fully parallel over (row block, hw chunk).
    out = pl.pallas_call(
        functools.partial(_apply_kernel, inv_hw=inv_hw, eps=float(eps)),
        out_shape=jax.ShapeDtypeStruct((rows, hw), dtype),
        grid=grid2,
        in_specs=[pl.BlockSpec((blk, hw_tile), lambda i, k: (i, k)),
                  pl.BlockSpec((blk, 1), lambda i, k: (i, 0)),
                  pl.BlockSpec((blk, 1), lambda i, k: (i, 0))],
        out_specs=pl.BlockSpec((blk, hw_tile), lambda i, k: (i, k)),
        compiler_params=pltpu.CompilerParams(
            dimension_semantics=("parallel", "parallel"),
            vmem_limit_bytes=vmem_limit,
        ),
    )(x2, sums, sqs)
    return out.reshape(N, C, H, W)


# --------------------------------------------------------------------------
# Reference + test
# --------------------------------------------------------------------------
def _reference(x, eps=1e-5):
    x = x.astype(jnp.float32)
    mean = jnp.mean(x, axis=(2, 3), keepdims=True)
    var = jnp.mean((x - mean) ** 2, axis=(2, 3), keepdims=True)
    return jnp.maximum((x - mean) / jnp.sqrt(var + eps), 0.0)


if __name__ == "__main__":
    k0, k1, k2 = jax.random.split(jax.random.PRNGKey(0), 3)

    # Main case (matches the PyTorch module usage): InstanceNorm2d(affine=False) + ReLU.
    x = jax.random.normal(k0, (2, 4, 16, 16), dtype=jnp.float32)
    out = jax.block_until_ready(instance_norm_relu(x))
    assert out.shape == (2, 4, 16, 16)
    assert jnp.allclose(out, _reference(x), atol=1e-4, rtol=1e-4), "mismatch (fused path)"

    # Ragged rows (15) and ragged H*W (63): no host pad / slice, in-kernel handling.
    xb = jax.random.normal(k1, (3, 5, 7, 9), dtype=jnp.float32)
    outb = jax.block_until_ready(instance_norm_relu(xb))
    assert jnp.allclose(outb, _reference(xb), atol=1e-4, rtol=1e-4), "mismatch (ragged fused path)"

    # Exercise the spatial-chunked two-pass path with a ragged final hw chunk
    # (hw = 400, tile = 128 -> 4 chunks, last one masked).
    xc = jax.random.normal(k2, (2, 4, 16, 25), dtype=jnp.float32)
    outc = jax.block_until_ready(instance_norm_relu(xc, force_hw_tile=128))
    assert jnp.allclose(outc, _reference(xc), atol=1e-4, rtol=1e-4), "mismatch (chunked path)"

    print("KERNEL_OK")
</pallas_src>

<mosaic_0001>
module attributes {stable_mosaic.version = 11 : i64} {
  func.func @_fused_kernel(%arg0: i32, %arg1: memref<8x256xf32, #tpu.memory_space<vmem>>, %arg2: memref<8x256xf32, #tpu.memory_space<vmem>>) attributes {dimension_semantics = [#tpu.dimension_semantics<parallel>], iteration_bounds = array<i64: 1>, scalar_prefetch = 0 : i64, scratch_operands = 0 : i64, tpu.core_type = #tpu.core_type<tc>, window_params = [{transform_indices = @transform_0, window_bounds = array<i64: 8, 256>}, {transform_indices = @transform_1, window_bounds = array<i64: 8, 256>}]} {
    %c0 = arith.constant 0 : index
    %c0_0 = arith.constant 0 : index
    %0 = vector.load %arg1[%c0, %c0_0] : memref<8x256xf32, #tpu.memory_space<vmem>>, vector<8x256xf32>
    %cst = arith.constant dense<0.000000e+00> : vector<8xf32>
    %1 = vector.multi_reduction <add>, %0, %cst [1] : vector<8x256xf32> to vector<8xf32>
    %2 = vector.shape_cast %1 : vector<8xf32> to vector<8x1xf32>
    %cst_1 = arith.constant 3.906250e-03 : f32
    %3 = vector.broadcast %cst_1 : f32 to vector<8x1xf32>
    %4 = arith.mulf %2, %3 : vector<8x1xf32>
    %5 = vector.broadcast %4 : vector<8x1xf32> to vector<8x256xf32>
    %6 = arith.subf %0, %5 : vector<8x256xf32>
    %7 = arith.mulf %6, %6 : vector<8x256xf32>
    %cst_2 = arith.constant dense<0.000000e+00> : vector<8xf32>
    %8 = vector.multi_reduction <add>, %7, %cst_2 [1] : vector<8x256xf32> to vector<8xf32>
    %9 = vector.shape_cast %8 : vector<8xf32> to vector<8x1xf32>
    %cst_3 = arith.constant 3.906250e-03 : f32
    %10 = vector.broadcast %cst_3 : f32 to vector<8x1xf32>
    %11 = arith.mulf %9, %10 : vector<8x1xf32>
    %cst_4 = arith.constant 9.99999974E-6 : f32
    %12 = vector.broadcast %cst_4 : f32 to vector<8x1xf32>
    %13 = arith.addf %11, %12 : vector<8x1xf32>
    %14 = math.rsqrt %13 : vector<8x1xf32>
    %15 = vector.broadcast %14 : vector<8x1xf32> to vector<8x256xf32>
    %16 = arith.mulf %6, %15 : vector<8x256xf32>
    %cst_5 = arith.constant 0.000000e+00 : f32
    %17 = vector.broadcast %cst_5 : f32 to vector<8x256xf32>
    %18 = arith.maximumf %16, %17 : vector<8x256xf32>
    %c0_6 = arith.constant 0 : index
    %c0_7 = arith.constant 0 : index
    %19 = vector.load %arg2[%c0_6, %c0_7] : memref<8x256xf32, #tpu.memory_space<vmem>>, vector<8x256xf32>
    tpu.vector_store %arg2[%c0_6, %c0_7], %18 {strides = array<i32>} : memref<8x256xf32, #tpu.memory_space<vmem>>, vector<8x256xf32>,
    return
  }
  func.func @transform_0(%arg0: i32) -> (i32, i32) {
    %c0_i32 = arith.constant 0 : i32
    %c0_i32_0 = arith.constant 0 : i32
    return %arg0, %c0_i32 : i32, i32
  }
  func.func @transform_1(%arg0: i32) -> (i32, i32) {
    %c0_i32 = arith.constant 0 : i32
    %c0_i32_0 = arith.constant 0 : i32
    return %arg0, %c0_i32 : i32, i32
  }
}

</mosaic_0001>

<bundles_post_ra>
// kernel: tpu_custom_call.1
= control target key start
LH: loop header
LB: loop body
LE: loop exit
PB: predicated region body
PF: predicated region fallthrough
CT: control target
= control target key end

     0   :  { %6 = vsyncpa [#allocation3], 0  ;;  %s124_s0 = inlined_call_operand.hbm [shape: f32[8,256], index: 0, kind: input, shape index: {}]   ;;  %s125_s1 = inlined_call_operand.hbm [shape: f32[8,256], index: 1, kind: output, shape index: {}]  }
   0x1   :  { %7 = vsyncpa [#allocation4], 0  ;;  %s106_s6 = smov [#allocation2]  }
   0x2   :  { %s14_s7 = sshll.u32 %s106_s6, 4  ;;  %s15_s7 = int_to_ptr.vmem [resolvable:$true] %s14_s7 }
   0x3   :  { %s70_s8 = scalar_lea.vmem %s15_s7, 256  ;;  %p75_p1 = scmp.lt.s32.totalorder %s15_s7, %s15_s7 }
   0x4   :  { %p71_p0 = scmp.ne.s32.totalorder %s15_s7, %s70_s8  ;;  %p76_p2 = scmp.lt.s32.totalorder %s70_s8, %s70_s8 }
   0x6   :  { %p77_p3 = por %p76_p2, %p75_p1 }
   0x8   :  { %p78_p4 = pnand %p77_p3, %p71_p0 }
   0xa   :  { %81 = shalt.err (!%p78_p4)
}
   0xb   :  { %17 = dma.hbm_to_vmem [thread:$0]  %s124_s0, 256, %s15_s7, [#allocation3]  }
   0xc   :  { %102 = dma.done.wait [#allocation3], 256  }
   0xd   :  { %103 = vsyncadd [#allocation3], 4294967040  ;;  %v21_v0 = vld [vmem:[#allocation2] sm:$0xff]  ;;  %v22_v1 = vld [vmem:[#allocation2 + $0x8] sm:$0xff]  ;;  %s107_s0 = smov [#allocation5]  }
   0xe   :  { %v23_v2 = vadd.f32 %v22_v1, %v21_v0  ;;  %s49_s11 = sshll.u32 %s107_s0, 4  ;;  %s50_s11 = int_to_ptr.vmem [resolvable:$true] %s49_s11 }
   0xf   :  { %s82_s12 = scalar_lea.vmem %s50_s11, 256  ;;  %p87_p6 = scmp.lt.s32.totalorder %s50_s11, %s50_s11 }
  0x10   :  { %24 = vadd.xlane.f32.xlu0 %v23_v2  ;;  %p83_p5 = scmp.ne.s32.totalorder %s50_s11, %s82_s12  ;;  %p88_p7 = scmp.lt.s32.totalorder %s82_s12, %s82_s12 }
  0x12   :  { %p89_p8 = por %p88_p7, %p87_p6 }
  0x14   :  { %p90_p9 = pnand %p89_p8, %p83_p5 }
  0x99   :  { %v25_v3 = vpop.xlane.xlu0 %24 }
  0x9a   :  { %v26_v4 = vmul.f32 0.00390625, %v25_v3 }
  0x9c   :  { %v27_v5 = vsub.f32 %v21_v0, %v26_v4  ;;  %v28_v6 = vsub.f32 %v22_v1, %v26_v4 }
  0x9e   :  { %v29_v7 = vmul.f32 %v27_v5, %v27_v5  ;;  %v30_v8 = vmul.f32 %v28_v6, %v28_v6 }
  0xa0   :  { %v31_v9 = vadd.f32 %v30_v8, %v29_v7 }
  0xa2   :  { %32 = vadd.xlane.f32.xlu0 %v31_v9 }
 0x12b   :  { %v33_v10 = vpop.xlane.xlu0 %32 }
 0x12c   :  { %v34_v11 = vmul.f32 0.00390625, %v33_v10 }
 0x12e   :  { %v35_v12 = vadd.f32 1e-05, %v34_v11 }
 0x130   :  { %60 = vrsqrt.f32 %v35_v12 }
 0x13d   :  { %v61_v13 = vpop.eup %60 }
 0x13e   :  { %v37_v14 = vmul.f32 %v61_v13, %v27_v5  ;;  %v38_v15 = vmul.f32 %v61_v13, %v28_v6 }
 0x140   :  { %v39_v16 = vmax.f32 %v37_v14, 0.0  ;;  %v40_v17 = vmax.f32 %v38_v15, 0.0 }
 0x142   :  { %41 = vst [vmem:[#allocation5] sm:$0xff] %v39_v16  ;;  %42 = vst [vmem:[#allocation5 + $0x8] sm:$0xff] %v40_v17 }
 0x143   :  { %93 = shalt.err (!%p90_p9)
}
 0x144   :  { %52 = dma.vmem_to_hbm [thread:$0]  %s50_s11, 256, %s125_s1, [#allocation4]  }
 0x145   :  { %104 = dma.done.wait [#allocation4], 256  }
 0x146   :  { %105 = vsyncadd [#allocation4], 4294967040 }
 0x147   :  { %56 = vsyncpa [#allocation3], 1 }
 0x148   :  { %57 = vsyncpa [#allocation4], 1 }

</bundles_post_ra>
